<compile_context>
chip_gen: v7x
topology: tpu7x:2x2x1
jax: 0.10.0
libtpu: 0.0.40
codegen_flags: <defaults>
</compile_context>

<pallas_src>
import functools

import jax
import jax.numpy as jnp
from jax.experimental import pallas as pl
from jax.experimental.pallas import tpu as pltpu


# ---------------------------------------------------------------------------
# concat:  out[b] = concat(vis[b // n_tile], txt[b]) along the sequence axis
# ---------------------------------------------------------------------------
def _concat_kernel(vis_ref, txt_ref, out_ref):
    # vis_ref: (1, l, dim); txt_ref: (n_tile, t_len, dim);
    # out_ref: (n_tile, l + t_len, dim).  Each output byte written exactly once.
    nt, _, dim = txt_ref.shape
    l = vis_ref.shape[1]
    out_ref[:, :l, :] = jnp.broadcast_to(vis_ref[...], (nt, l, dim))
    out_ref[:, l:, :] = txt_ref[...]


def concat_vis_txt(vis, txt, n_tile):
    bs_t, t_len, dim = txt.shape
    bs_v, l, _ = vis.shape
    assert bs_t == bs_v * n_tile, "txt batch must be n_tile * vis batch"
    out_len = l + t_len
    # TODO(synk): for very long sequences / big dim (v7x has only 64 MiB VMEM),
    # add a second grid axis over sequence tiles (~512 rows) and raise
    # vmem_limit_bytes via CompilerParams.
    return pl.pallas_call(
        _concat_kernel,
        out_shape=jax.ShapeDtypeStruct((bs_t, out_len, dim), txt.dtype),
        grid=(bs_v,),
        in_specs=[
            pl.BlockSpec((1, l, dim), lambda b: (b, 0, 0)),        # vis read once/group
            pl.BlockSpec((n_tile, t_len, dim), lambda b: (b, 0, 0)),
        ],
        out_specs=pl.BlockSpec((n_tile, out_len, dim), lambda b: (b, 0, 0)),
        compiler_params=pltpu.CompilerParams(dimension_semantics=("parallel",)),
    )(vis, txt)


# ---------------------------------------------------------------------------
# overwrite (token_added path): txt[:, :l, :] = vis[b // n_tile]   (in place)
# ---------------------------------------------------------------------------
def _overwrite_prefix_kernel(vis_ref, txt_hbm_ref, out_ref):
    # out_ref covers only the (n_tile, l, dim) prefix of the aliased txt buffer;
    # the suffix tokens stay untouched in HBM (never DMA'd).
    del txt_hbm_ref  # aliased to the output, not read
    out_ref[...] = jnp.broadcast_to(vis_ref[...], out_ref.shape)


def overwrite_txt_prefix(vis, txt, n_tile):
    bs_t, t_len, dim = txt.shape
    bs_v, l, _ = vis.shape
    assert bs_t == bs_v * n_tile, "txt batch must be n_tile * vis batch"
    # NOTE: the prefix out-block needs l % 8 == 0 (f32 sublane; 16 for bf16) or
    # l == t_len for unmasked stores — true for eP-ALM's visual-prefix lengths.
    # txt is donated/aliased: callers must not reuse the original txt array.
    return pl.pallas_call(
        _overwrite_prefix_kernel,
        out_shape=jax.ShapeDtypeStruct((bs_t, t_len, dim), txt.dtype),
        grid=(bs_v,),
        in_specs=[
            pl.BlockSpec((1, l, dim), lambda b: (b, 0, 0)),
            pl.BlockSpec(memory_space=pl.ANY),   # txt stays in HBM (aliased)
        ],
        out_specs=pl.BlockSpec((n_tile, l, dim), lambda b: (b, 0, 0)),
        input_output_aliases={1: 0},             # output buffer == txt buffer
        compiler_params=pltpu.CompilerParams(dimension_semantics=("parallel",)),
    )(vis, txt)


# ---------------------------------------------------------------------------
# mask pad:  F.pad(mask, (l, 0, l, 0, 0, 0, 0, 0), value=0)
# ---------------------------------------------------------------------------
def _pad_mask_kernel(mask_ref, out_ref, *, l):
    blk, tgt, src = mask_ref.shape
    dt = out_ref.dtype
    # rows [0, l): all-zero top border — one full-lane-width store.
    out_ref[:, :l, :] = jnp.zeros((blk, l, src + l), dt)
    # rows [l, l+tgt): assemble [zeros(l) | mask] along the lane axis in
    # registers, then store the full row width once (lane-dense store; the
    # lane shift is register work, not a masked/offset partial store).
    shifted = jnp.concatenate([jnp.zeros((blk, tgt, l), dt), mask_ref[...]],
                              axis=-1)
    out_ref[:, l:, :] = shifted


def _row_block(n, max_rows=8):
    # Largest row-block <= max_rows dividing n, preferring >= 2 grid steps so
    # both v7x TensorCores get work, while still amortizing per-step overhead.
    for b in (max_rows, 4, 2, 1):
        if b <= max_rows and n % b == 0 and n // b >= 2:
            return b
    return n


def pad_attention_mask(mask, l):
    bs, h, tgt, src = mask.shape
    bh = bs * h
    m2 = mask.reshape(bh, tgt, src)          # fold bs,h into one dense axis
    bh_blk = _row_block(bh)
    out = pl.pallas_call(
        functools.partial(_pad_mask_kernel, l=l),
        out_shape=jax.ShapeDtypeStruct((bh, tgt + l, src + l), mask.dtype),
        grid=(bh // bh_blk,),
        in_specs=[pl.BlockSpec((bh_blk, tgt, src), lambda b: (b, 0, 0))],
        out_specs=pl.BlockSpec((bh_blk, tgt + l, src + l), lambda b: (b, 0, 0)),
        compiler_params=pltpu.CompilerParams(dimension_semantics=("parallel",)),
    )(m2)
    return out.reshape(bs, h, tgt + l, src + l)


# ---------------------------------------------------------------------------
# CAT.forward
# ---------------------------------------------------------------------------
def cat_forward(txt, vis, kwargs_):
    """JAX/Pallas equivalent of CAT.forward (CAT has no parameters)."""
    tgt_len, src_len = kwargs_["tgt_len"], kwargs_["src_len"]
    token_added = kwargs_["token_added"]
    attention_mask = kwargs_["attention_mask"]
    bs_v, l, _ = vis.shape
    bs_t = txt.shape[0]
    if bs_v != bs_t:
        assert bs_t % bs_v == 0, "txt batch must be a multiple of vis batch"
        n_tile = bs_t // bs_v
    else:
        n_tile = 1
    # The module's tile() (repeat + order_index) is exactly repeat_interleave
    # on the batch dim: tiled[b] == vis[b // n_tile]. That mapping is realized
    # by gridding over bs_v and broadcasting vis over n_tile txt rows.

    if token_added and tgt_len == src_len:
        txt = overwrite_txt_prefix(vis, txt, n_tile)   # txt donated (in-place)
    elif tgt_len == src_len:
        txt = concat_vis_txt(vis, txt, n_tile)
        attention_mask = pad_attention_mask(attention_mask, l)
    else:
        raise ValueError("tgt_len != src_len")
    return [txt, {"attention_mask": attention_mask, "token_added": True}]


if __name__ == "__main__":
    key = jax.random.PRNGKey(0)
    k_txt, k_vis, k_mask = jax.random.split(key, 3)

    bs_v, bs_t = 2, 4          # vis batch gets tiled (repeat_interleave) to txt batch
    l = 8                      # vis sequence length
    tgt_len = src_len = 8      # txt sequence length
    dim = 128                  # hidden dim (lane-aligned)
    heads = 2

    txt = jax.random.normal(k_txt, (bs_t, tgt_len, dim), dtype=jnp.float32)
    vis = jax.random.normal(k_vis, (bs_v, l, dim), dtype=jnp.float32)
    attention_mask = jax.random.normal(k_mask, (bs_t, heads, tgt_len, src_len),
                                       dtype=jnp.float32)

    vis_tiled = jnp.repeat(vis, bs_t // bs_v, axis=0)   # == the module's tile()

    # --- branch 1: token_added=False -> concat + mask padding ---
    ref_txt = jnp.concatenate([vis_tiled, txt], axis=1)
    ref_mask = jnp.pad(attention_mask, ((0, 0), (0, 0), (l, 0), (l, 0)))
    kwargs_ = dict(tgt_len=tgt_len, src_len=src_len, token_added=False,
                   attention_mask=attention_mask)
    out_txt, out_kw = cat_forward(txt, vis, kwargs_)
    out_txt = jax.block_until_ready(out_txt)
    out_mask = jax.block_until_ready(out_kw["attention_mask"])
    assert out_txt.shape == (bs_t, l + tgt_len, dim)
    assert out_mask.shape == (bs_t, heads, tgt_len + l, src_len + l)
    assert jnp.allclose(out_txt, ref_txt)
    assert jnp.allclose(out_mask, ref_mask)
    assert out_kw["token_added"] is True

    # --- branch 2: token_added=True -> overwrite first l txt tokens with vis ---
    # txt2 is aliased/donated into the kernel output, so build the reference
    # BEFORE calling the kernel and do not reuse txt2 afterwards.
    txt2 = jax.random.normal(jax.random.PRNGKey(1), (bs_t, tgt_len, dim),
                             dtype=jnp.float32)
    ref_txt2 = jax.block_until_ready(txt2.at[:, :l, :].set(vis_tiled[:, :l, :]))
    kwargs2_ = dict(tgt_len=tgt_len, src_len=src_len, token_added=True,
                    attention_mask=attention_mask)
    out_txt2, out_kw2 = cat_forward(txt2, vis, kwargs2_)
    out_txt2 = jax.block_until_ready(out_txt2)
    assert jnp.allclose(out_txt2, ref_txt2)
    assert jnp.allclose(out_kw2["attention_mask"], attention_mask)
    assert out_kw2["token_added"] is True

    print("KERNEL_OK")
</pallas_src>

<mosaic_0001>
module attributes {stable_mosaic.version = 11 : i64} {
  func.func @_concat_kernel(%arg0: i32, %arg1: memref<1x8x128xf32, #tpu.memory_space<vmem>>, %arg2: memref<2x8x128xf32, #tpu.memory_space<vmem>>, %arg3: memref<2x16x128xf32, #tpu.memory_space<vmem>>) attributes {dimension_semantics = [#tpu.dimension_semantics<parallel>], iteration_bounds = array<i64: 2>, scalar_prefetch = 0 : i64, scratch_operands = 0 : i64, tpu.core_type = #tpu.core_type<tc>, window_params = [{transform_indices = @transform_0, window_bounds = array<i64: 1, 8, 128>}, {transform_indices = @transform_1, window_bounds = array<i64: 2, 8, 128>}, {transform_indices = @transform_2, window_bounds = array<i64: 2, 16, 128>}]} {
    %c0 = arith.constant 0 : index
    %c0_0 = arith.constant 0 : index
    %c0_1 = arith.constant 0 : index
    %0 = vector.load %arg1[%c0, %c0_0, %c0_1] : memref<1x8x128xf32, #tpu.memory_space<vmem>>, vector<1x8x128xf32>
    %1 = vector.shape_cast %0 : vector<1x8x128xf32> to vector<1x8x128xf32>
    %2 = vector.broadcast %1 : vector<1x8x128xf32> to vector<2x8x128xf32>
    %c0_2 = arith.constant 0 : index
    %c0_3 = arith.constant 0 : index
    %c0_4 = arith.constant 0 : index
    %3 = vector.load %arg3[%c0_2, %c0_3, %c0_4] : memref<2x16x128xf32, #tpu.memory_space<vmem>>, vector<2x8x128xf32>
    tpu.vector_store %arg3[%c0_2, %c0_3, %c0_4], %2 {strides = array<i32>} : memref<2x16x128xf32, #tpu.memory_space<vmem>>, vector<2x8x128xf32>,
    %c0_5 = arith.constant 0 : index
    %c0_6 = arith.constant 0 : index
    %c0_7 = arith.constant 0 : index
    %4 = vector.load %arg2[%c0_5, %c0_6, %c0_7] : memref<2x8x128xf32, #tpu.memory_space<vmem>>, vector<2x8x128xf32>
    %c0_8 = arith.constant 0 : index
    %c8 = arith.constant 8 : index
    %c0_9 = arith.constant 0 : index
    %5 = vector.load %arg3[%c0_8, %c8, %c0_9] : memref<2x16x128xf32, #tpu.memory_space<vmem>>, vector<2x8x128xf32>
    tpu.vector_store %arg3[%c0_8, %c8, %c0_9], %4 {strides = array<i32>} : memref<2x16x128xf32, #tpu.memory_space<vmem>>, vector<2x8x128xf32>,
    return
  }
  func.func @transform_0(%arg0: i32) -> (i32, i32, i32) {
    %c0_i32 = arith.constant 0 : i32
    %c0_i32_0 = arith.constant 0 : i32
    %c0_i32_1 = arith.constant 0 : i32
    return %arg0, %c0_i32, %c0_i32_0 : i32, i32, i32
  }
  func.func @transform_1(%arg0: i32) -> (i32, i32, i32) {
    %c0_i32 = arith.constant 0 : i32
    %c0_i32_0 = arith.constant 0 : i32
    %c0_i32_1 = arith.constant 0 : i32
    return %arg0, %c0_i32, %c0_i32_0 : i32, i32, i32
  }
  func.func @transform_2(%arg0: i32) -> (i32, i32, i32) {
    %c0_i32 = arith.constant 0 : i32
    %c0_i32_0 = arith.constant 0 : i32
    %c0_i32_1 = arith.constant 0 : i32
    return %arg0, %c0_i32, %c0_i32_0 : i32, i32, i32
  }
}

</mosaic_0001>

<bundles_post_ra>
// kernel: tpu_custom_call.1
= control target key start
LH: loop header
LB: loop body
LE: loop exit
PB: predicated region body
PF: predicated region fallthrough
CT: control target
= control target key end

     0   :  { %7 = vsyncpa [#allocation3], 0  ;;  %s764_s0 = inlined_call_operand.hbm [shape: f32[2,8,128], index: 0, kind: input, shape index: {}]   ;;  %s765_s1 = inlined_call_operand.hbm [shape: f32[4,8,128], index: 1, kind: input, shape index: {}]   ;;  %s766_s2 = inlined_call_operand.hbm [shape: f32[4,16,128], index: 2, kind: output, shape index: {}]  }
   0x1   :  { %9 = vsyncpa [#allocation3 + $0x1], 0 }
   0x2   :  { %10 = vsyncpa [#allocation6], 0 }
   0x3   :  { %12 = vsyncpa [#allocation6 + $0x1], 0 }
   0x4   :  { %13 = vsyncpa [#allocation4], 0 }
   0x5   :  { %15 = vsyncpa [#allocation4 + $0x1], 0  ;;  %s549_s9 = smov 0   ;;  %s551_s10 = smov 0  }
   0x6   :  { %s553_s11 = smov 0   ;;  %s555_s12 = smov 0  }
   0x7 LB: > { %s570_s13 = sadd.s32 4294967295, %s525_s12   ;;  %s319_s14 = sadd.s32 4294967294, %s525_s12   ;;  %s525_s12 = sphi %s555_s12, %s784_s12   ;;  %s521_s11 = sphi %s553_s11, %s783_s11   ;;  %s517_s10 = sphi %s551_s10, %s782_s10   ;;  %s513_s9 = sphi %s549_s9, %s781_s9  }
   0x8   : > { %s574_s15 = sadd.s32 1, %s525_s12   ;;  %s28_s16 = sadd.s32 1, %s521_s11 }
   0x9   : > { %s25_s17 = ssub.s32 %s525_s12, %s574_s15  ;;  %p35_p0 = scmp.ne.s32.totalorder %s521_s11, %s517_s10 }
   0xa   : > { %p26_p1 = scmp.eq.s32.totalorder %s25_s17, 0  ;;  %p36_p2 = scmp.eq.s32.totalorder %s525_s12, 0 }
   0xb   : > { %p41_p3 = scmp.ne.s32.totalorder %s517_s10, %s513_s9  ;;  %p42_p4 = scmp.eq.s32.totalorder %s570_s13, 0 }
   0xc   : > { %s586_s18 = scalar_select %p26_p1, %s521_s11, %s28_s16  }
   0xd   : > { %p588_p5 = por %p36_p2, %p35_p0  ;;  %p592_p6 = por %p42_p4, %p41_p3 }
   0xe   : > { %p91_p7 = scmp.eq.s32.totalorder %s570_s13, 1  ;;  %p97_p8 = scmp.eq.s32.totalorder %s319_s14, 1 }
   0xf   : > { %s770_s20 = scalar_select %p592_p6, 1, 0 }
  0x10   : > { %p357_p10 = scmp.lt.s32.totalorder %s525_s12, 2  ;;  %p599_p11 = por %p91_p7, %p35_p0 }
  0x11   : > { %p603_p12 = por %p97_p8, %p41_p3  ;;  %s608_s23 = sand.u32 1, %s521_s11  }
  0x12   : > { %s771_s21 = scalar_select %p599_p11, 1, 0 }
  0x13   : > { %s772_s22 = scalar_select %p603_p12, 1, 0 }
  0x14   : > { %s323_s24 = sshll.u32 %s525_s12, 7  ;;  %s322_s25 = sshll.u32 %s608_s23, 3 }
  0x15   : > { %s615_s28 = scalar_lea.hbm %s764_s0, %s323_s24  ;;  %s121_s29 = scalar_lea.vmem [#allocation2], %s322_s25 }
  0x16   : > { %s128_s30 = sshll.u32 %s121_s29, 4  ;;  %p619_p13 = pnand %p357_p10, %p588_p5  ;;  %s623_s30 = int_to_ptr.vmem [resolvable:$true] %s128_s30 }
  0x17   : > { %s118_s4 = scalar_lea.sflag [#allocation3], %s608_s23  ;;  %s395_s5 = scalar_lea.hbm %s615_s28, 128 }
  0x18   : > { %p396_p2 = scmp.ne.s32.totalorder %s615_s28, %s395_s5  ;;  %p397_p3 = pneg %p619_p13 }
  0x19   : > { %s400_s8 = scalar_lea.hbm %s764_s0, 256  ;;  %p401_p5 = scmp.lt.u32.totalorder %s615_s28, %s764_s0 }
  0x1a   : > { %p398_p4 = pnand %p397_p3, %p396_p2  ;;  %p402_p8 = scmp.lt.u32.totalorder %s400_s8, %s395_s5 }
  0x1b   : > { %p404_p9 = scmp.lt.u32.totalorder %s395_s5, %s615_s28 }
  0x1c   : > { %p399_p7 = pneg %p398_p4  ;;  %p403_p10 = por %p402_p8, %p401_p5 }
  0x1e   : > { %p405_p0 = por %p404_p9, %p403_p10 }
  0x20   : > { %p406_p1 = pnand %p405_p0, %p399_p7 }
  0x22   : > { %409 = shalt.err (!%p406_p1)
}
  0x23   : > { %s410_s17 = scalar_lea.vmem %s623_s30, 128  ;;  %s527_s19 = smov [#allocation2]  }
  0x24   : > { %p411_p2 = scmp.ne.s32.totalorder %s623_s30, %s410_s17  ;;  %s415_s24 = sshll.u32 %s527_s19, 4  ;;  %s416_s24 = int_to_ptr.vmem [resolvable:$false] %s415_s24 }
  0x25   : > { %s417_s25 = scalar_lea.vmem %s416_s24, 256  ;;  %p418_p11 = scmp.lt.s32.totalorder %s623_s30, %s416_s24 }
  0x26   : > { %p413_p4 = pnand %p411_p2, %p397_p3  ;;  %p419_p5 = scmp.lt.s32.totalorder %s417_s25, %s410_s17 }
  0x28   : > { %p414_p12 = pneg %p413_p4  ;;  %p420_p8 = por %p419_p5, %p418_p11 }
  0x2a   : > { %p421_p9 = pnand %p420_p8, %p414_p12 }
  0x2c   : > { %424 = shalt.err (!%p421_p9)
}
  0x2d   : > { %349 = dma.hbm_to_vmem [thread:$0]  (!%p619_p13), %s615_s28, 128, %s623_s30, %s118_s4  }
  0x2e   : > { %p774_p0 = scmp.lt.s32.totalorder %s525_s12, 3  ;;  %p775_p1 = scmp.ge.s32.totalorder %s525_s12, 1 }
  0x2f   : > { %s324_s27 = sshll.u32 %s608_s23, 4  ;;  %s337_s29 = sshll.u32 %s525_s12, 8 }
  0x30   : > { %p657_p7 = pnand %p775_p1, %p774_p0  ;;  %s666_s7 = scalar_lea.hbm %s765_s1, %s337_s29 }
  0x31   : > { %s139_s8 = scalar_lea.vmem [#allocation5], %s324_s27  ;;  %s136_s28 = scalar_lea.sflag [#allocation6], %s608_s23 }
  0x32   : > { %s146_s14 = sshll.u32 %s139_s8, 4  ;;  %s425_s30 = scalar_lea.hbm %s666_s7, 256  ;;  %s668_s14 = int_to_ptr.vmem [resolvable:$true] %s146_s14 }
  0x33   : > { %p426_p11 = scmp.ne.s32.totalorder %s666_s7, %s425_s30  ;;  %s430_s17 = scalar_lea.hbm %s765_s1, 512 }
  0x34   : > { %p431_p2 = scmp.lt.u32.totalorder %s666_s7, %s765_s1  ;;  %p432_p4 = scmp.lt.u32.totalorder %s430_s17, %s425_s30 }
  0x35   : > { %p428_p12 = pnand %p426_p11, %p397_p3  ;;  %p434_p8 = scmp.lt.u32.totalorder %s425_s30, %s666_s7 }
  0x36   : > { %p433_p5 = por %p432_p4, %p431_p2 }
  0x37   : > { %p429_p10 = pneg %p428_p12 }
  0x38   : > { %p435_p9 = por %p434_p8, %p433_p5 }
  0x3a   : > { %p436_p0 = pnand %p435_p9, %p429_p10 }
  0x3c   : > { %439 = shalt.err (!%p436_p0)
}
  0x3d   : > { %s440_s25 = scalar_lea.vmem %s668_s14, 256  ;;  %s528_s27 = smov [#allocation5]  }
  0x3e   : > { %p441_p1 = scmp.ne.s32.totalorder %s668_s14, %s440_s25  ;;  %s445_s29 = sshll.u32 %s528_s27, 4  ;;  %s446_s29 = int_to_ptr.vmem [resolvable:$false] %s445_s29 }
  0x3f   : > { %s447_s5 = scalar_lea.vmem %s446_s29, 512  ;;  %p448_p6 = scmp.lt.s32.totalorder %s668_s14, %s446_s29 }
  0x40   : > { %p443_p11 = pnand %p441_p1, %p397_p3  ;;  %p449_p2 = scmp.lt.s32.totalorder %s447_s5, %s440_s25 }
  0x42   : > { %p444_p12 = pneg %p443_p11  ;;  %p450_p4 = por %p449_p2, %p448_p6 }
  0x44   : > { %p451_p5 = pnand %p450_p4, %p444_p12 }
  0x46   : > { %454 = shalt.err (!%p451_p5)
}
  0x47   : > { %s529_s6 = smov 128   ;;  %s530_s8 = smov 8  }
  0x48   : > { %352 = dma.hbm_to_vmem [thread:$0]  (!%p619_p13), %s666_s7, 256, %s668_s14, %s136_s28, %s529_s6, %s529_s6, %s530_s8  }
  0x49   : > { %158 = sbr.rel (%p657_p7) target bundleno = 111 (0x6f), region = 28  ;;  %s699_s30 = sand.u32 (!%p657_p7), 1, %s517_s10  }
  0x4a   : > { %s328_s4 = sshll.u32 (!%p657_p7), %s699_s30, 3  ;;  %s161_s16 = scalar_lea.sflag (!%p657_p7), [#allocation3], %s699_s30 }
  0x4b   : > { %s164_s17 = scalar_lea.vmem (!%p657_p7), [#allocation2], %s328_s4  ;;  %p777_p6 = scmp.ne.s32.totalorder (!%p657_p7), %s770_s20, 0 }
  0x50   : > { %500 = dma.done.wait (%p777_p6), %s161_s16, 128  }
  0x51   : > { %502 = vsyncadd (%p777_p6), %s161_s16, 4294967168  ;;  %s329_s23 = sshll.u32 %s699_s30, 4  ;;  %s170_s3 = scalar_lea.sflag [#allocation6], %s699_s30 }
  0x52   : > { %s173_s26 = scalar_lea.vmem [#allocation5], %s329_s23 }
  0x53   : > { %504 = dma.done.wait (%p777_p6), %s170_s3, 256  }
  0x54   : > { %506 = vsyncadd (%p777_p6), %s170_s3, 4294967040  ;;  %s330_s7 = sshll.u32 %s699_s30, 5  ;;  %s339_s19 = sshll.u32 %s570_s13, 9  ;;  %v201_v0 = vld [vmem:[%s164_s17] sm:$0xff]  ;;  %v204_v1 = vld [vmem:[%s173_s26] sm:$0xff] }
  0x55   : > { %s198_s14 = scalar_lea.vmem [#allocation7], %s330_s7  ;;  %s720_s27 = scalar_lea.hbm %s766_s2, %s339_s19  ;;  %v205_v2 = vld [vmem:[%s173_s26 + $0x8] sm:$0xff] }
  0x56   : > { %s223_s28 = sshll.u32 %s198_s14, 4  ;;  %202 = vst [vmem:[%s198_s14] sm:$0xff] %v201_v0  ;;  %203 = vst [vmem:[%s198_s14 + $0x10] sm:$0xff] %v201_v0  ;;  %s209_s20 = scalar_lea.sflag [#allocation4], %s699_s30  ;;  %s715_s28 = int_to_ptr.vmem [resolvable:$true] %s223_s28 }
  0x57   : > { %206 = vst [vmem:[%s198_s14 + $0x8] sm:$0xff] %v204_v1  ;;  %207 = vst [vmem:[%s198_s14 + $0x18] sm:$0xff] %v205_v2  ;;  %s455_s29 = scalar_lea.vmem %s715_s28, 512  ;;  %p778_p3 = scmp.ne.s32.totalorder %s771_s21, 0 }
  0x58   : > { %p456_p13 = scmp.ne.s32.totalorder %s715_s28, %s455_s29  ;;  %s531_s13 = smov [#allocation7]  }
  0x59   : > { %s459_s5 = sshll.u32 %s531_s13, 4  ;;  %s460_s5 = int_to_ptr.vmem [resolvable:$false] %s459_s5 }
  0x5a   : > { %p457_p7 = pnand %p456_p13, %p778_p3  ;;  %s461_s6 = scalar_lea.vmem %s460_s5, 1024 }
  0x5b   : > { %p462_p8 = scmp.lt.s32.totalorder %s715_s28, %s460_s5  ;;  %p463_p9 = scmp.lt.s32.totalorder %s461_s6, %s455_s29 }
  0x5c   : > { %p458_p10 = pneg %p457_p7 }
  0x5d   : > { %p464_p0 = por %p463_p9, %p462_p8 }
  0x5f   : > { %p465_p1 = pnand %p464_p0, %p458_p10 }
  0x61   : > { %468 = shalt.err (!%p465_p1)
}
  0x62   : > { %s469_s8 = scalar_lea.hbm %s720_s27, 512  ;;  %s473_s17 = scalar_lea.hbm %s766_s2, 1024 }
  0x63   : > { %p470_p11 = scmp.ne.s32.totalorder %s720_s27, %s469_s8  ;;  %p474_p4 = scmp.lt.u32.totalorder %s720_s27, %s766_s2 }
  0x64   : > { %p475_p5 = scmp.lt.u32.totalorder %s473_s17, %s469_s8  ;;  %p477_p13 = scmp.lt.u32.totalorder %s469_s8, %s720_s27 }
  0x65   : > { %p471_p12 = pnand %p470_p11, %p778_p3 }
  0x66   : > { %p476_p6 = por %p475_p5, %p474_p4 }
  0x67   : > { %p472_p2 = pneg %p471_p12 }
  0x68   : > { %p478_p7 = por %p477_p13, %p476_p6 }
  0x6a   : > { %p479_p10 = pnand %p478_p7, %p472_p2 }
  0x6c   : > { %482 = shalt.err (!%p479_p10)
}
  0x6d   : > { %s532_s26 = smov 128   ;;  %s533_s7 = smov 8  }
  0x6e   : > { %344 = dma.vmem_to_hbm [thread:$0]  (%p778_p3), %s715_s28, 512, %s720_s27, %s209_s20, %s532_s26, %s532_s26, %s533_s7  }
  0x6f PF: > { %s238_s14 = sand.u32 1, %s513_s9   ;;  %p779_p8 = scmp.ne.s32.totalorder %s772_s22, 0 }
  0x70   : > { %p780_p9 = scmp.ge.s32.totalorder %s525_s12, 2  ;;  %s239_s19 = scalar_lea.sflag [#allocation4], %s238_s14 }
  0x72   : > { %p354_p0 = pnand %p780_p9, %p779_p8 }
  0x74   : > { %508 = dma.done.wait (!%p354_p0), %s239_s19, 512  }
  0x75   : > { %510 = vsyncadd (!%p354_p0), %s239_s19, 4294966784  ;;  %p18_p1 = scmp.ge.s32.totalorder %s574_s15, 4   ;;  %s781_s9 = smov %s517_s10 }
  0x76   : > { %s782_s10 = smov %s521_s11  ;;  %s783_s11 = smov %s586_s18 }
  0x77   : > { %s784_s12 = smov %s574_s15  ;;  %20 = sbr.rel (!%p18_p1) target bundleno = 7 (0x7), region = 86 }
  0x7e   :  { %244 = vsyncpa [#allocation3], 1 }
  0x7f   :  { %246 = vsyncpa [#allocation3 + $0x1], 1 }
  0x80   :  { %247 = vsyncpa [#allocation6], 1 }
  0x81   :  { %249 = vsyncpa [#allocation6 + $0x1], 1 }
  0x82   :  { %250 = vsyncpa [#allocation4], 1 }
  0x83   :  { %252 = vsyncpa [#allocation4 + $0x1], 1 }

</bundles_post_ra>
